<compile_context>
chip_gen: v7x
topology: tpu7x:2x2x1
jax: 0.10.0
libtpu: 0.0.40
codegen_flags: <defaults>
</compile_context>

<pallas_src>
import functools

import jax
import jax.numpy as jnp
from jax.experimental import pallas as pl
from jax.experimental.pallas import tpu as pltpu


def _round_up(x, m):
    return (x + m - 1) // m * m


def _mlp3_kernel(x_ref, w1_ref, b1_ref, w2_ref, b2_ref, o_ref, *, matmul_dtype):
    # x_ref:  (TB, n_in)          one batch tile per grid step (double-buffered)
    # w1_ref: (n_in, n_hid_p)     VMEM-resident (constant index_map)
    # b1_ref: (1, n_hid_p)        f32
    # w2_ref: (n_hid_p, n_class)  VMEM-resident
    # b2_ref: (1, n_class)        f32
    # o_ref:  (TB, n_class)       f32 logits
    x = x_ref[...]
    if matmul_dtype is not None:
        x = x.astype(matmul_dtype)              # in-kernel cast: no extra HBM pass
    h = jnp.dot(x, w1_ref[...], preferred_element_type=jnp.float32)
    h = jnp.tanh(h + b1_ref[...])               # bias + tanh in f32 (safe on v5e)
    h = h.astype(w2_ref.dtype)                  # match MXU operand dtype of 2nd dot
    y = jnp.dot(h, w2_ref[...], preferred_element_type=jnp.float32) + b2_ref[...]
    # Dropout(p) == identity in eval mode.
    o_ref[...] = y.astype(o_ref.dtype)


def mpl_3_layer_classifier(x, w1, b1, w2, b2, *, matmul_dtype=None, tb=None,
                           core_parallel=False, vmem_limit_bytes=48 << 20):
    """Fused Flatten -> Linear -> Tanh -> Linear (eval-mode Dropout = identity).

    x:  (B, ...) flattened to (B, N_input)
    w1: (N_input, N_hidden), b1: (N_hidden,)
    w2: (N_hidden, N_class), b2: (N_class,)
    Returns (B, N_class) float32 logits.

    matmul_dtype: optional MXU operand dtype (e.g. jnp.bfloat16); the activation
      is cast inside the kernel (no extra HBM pass), weights in the wrapper.
    core_parallel: set True on v7x (2 TensorCores / chip) to shard the batch grid
      axis across cores; leave False on single-core v5e/v6e.
    """
    B = x.shape[0]
    x2d = x.reshape(B, -1)                      # nn.Flatten() — metadata only
    n_in, n_hidden = w1.shape
    _, n_class = w2.shape
    assert x2d.shape[1] == n_in

    # Only the tiny, VMEM-resident weights get lane padding; the activation and
    # the output keep their natural shapes in HBM (no pad/copy materialized).
    n_hid_p = _round_up(n_hidden, 128)
    w_dtype = matmul_dtype if matmul_dtype is not None else w1.dtype
    w1p = jnp.pad(w1, ((0, 0), (0, n_hid_p - n_hidden))).astype(w_dtype)
    w2p = jnp.pad(w2, ((0, n_hid_p - n_hidden), (0, 0))).astype(w_dtype)
    b1p = jnp.pad(b1.reshape(1, -1), ((0, 0), (0, n_hid_p - n_hidden))).astype(jnp.float32)
    b2p = b2.reshape(1, -1).astype(jnp.float32)

    # Batch tile: big enough that per-step overhead is noise next to the input
    # DMA, small enough that double-buffered tiles fit v7x's 64 MiB VMEM.
    if tb is None:
        tb = 2048
    TB = min(tb, B)
    if TB != B:
        TB = _round_up(TB, 16)                  # 16-row aligned (f32 & bf16 tiles)
    grid = pl.cdiv(B, TB)                       # ragged last block handled by Pallas

    x_item = jnp.dtype(x2d.dtype).itemsize
    w_item = jnp.dtype(w_dtype).itemsize
    cost = pl.CostEstimate(
        flops=2 * B * (n_in * n_hid_p + n_hid_p * n_class),
        transcendentals=B * n_hid_p,
        bytes_accessed=B * n_in * x_item
        + (n_in * n_hid_p + n_hid_p * n_class) * w_item
        + (n_hid_p + n_class) * 4
        + B * n_class * 4,
    )

    batch_sem = pltpu.CORE_PARALLEL if core_parallel else "parallel"

    out = pl.pallas_call(
        functools.partial(_mlp3_kernel, matmul_dtype=matmul_dtype),
        out_shape=jax.ShapeDtypeStruct((B, n_class), jnp.float32),
        grid=(grid,),
        in_specs=[
            pl.BlockSpec((TB, n_in), lambda i: (i, 0)),        # batch-tiled input
            # Constant index_map => weights/biases stay VMEM-resident across
            # steps (double-buffered copies < 1 MiB, so pl.Buffered(1) skipped).
            pl.BlockSpec((n_in, n_hid_p), lambda i: (0, 0)),
            pl.BlockSpec((1, n_hid_p), lambda i: (0, 0)),
            pl.BlockSpec((n_hid_p, n_class), lambda i: (0, 0)),
            pl.BlockSpec((1, n_class), lambda i: (0, 0)),
        ],
        out_specs=pl.BlockSpec((TB, n_class), lambda i: (i, 0)),
        compiler_params=pltpu.CompilerParams(
            dimension_semantics=(batch_sem,),
            vmem_limit_bytes=vmem_limit_bytes,
        ),
        cost_estimate=cost,
    )(x2d, w1p, b1p, w2p, b2p)

    return out


def init_linear_params(key, fan_in, fan_out, dtype=jnp.float32):
    """PyTorch nn.Linear default init: U(-1/sqrt(fan_in), 1/sqrt(fan_in))."""
    kw, kb = jax.random.split(key)
    bound = 1.0 / jnp.sqrt(fan_in)
    # stored already transposed: (fan_in, fan_out)
    w = jax.random.uniform(kw, (fan_in, fan_out), dtype, -bound, bound)
    b = jax.random.uniform(kb, (fan_out,), dtype, -bound, bound)
    return w, b


if __name__ == "__main__":
    # MNIST-like shapes consistent with the module: 1x28x28 -> 784
    B, C, H, W = 2, 1, 28, 28
    N_input = C * H * W                 # 784
    N_tanh_activate = 32
    N_class = 10

    key = jax.random.PRNGKey(0)
    kx, k1, k2 = jax.random.split(key, 3)

    x = jax.random.normal(kx, (B, C, H, W), jnp.float32)      # NCHW input
    w1, b1 = init_linear_params(k1, N_input, N_tanh_activate)
    w2, b2 = init_linear_params(k2, N_tanh_activate, N_class)

    # reference (eval-mode dropout == identity)
    x2d = x.reshape(B, -1)
    ref = jnp.tanh(x2d @ w1 + b1) @ w2 + b2

    # f32 operand path — tight tolerance
    y = jax.block_until_ready(mpl_3_layer_classifier(x, w1, b1, w2, b2))
    assert y.shape == (B, N_class)
    assert jnp.allclose(y, ref, atol=1e-5, rtol=1e-5)

    # bf16 MXU-operand path (cast happens in-kernel, no extra HBM round trip)
    y_bf16 = jax.block_until_ready(
        mpl_3_layer_classifier(x, w1, b1, w2, b2, matmul_dtype=jnp.bfloat16)
    )
    assert y_bf16.shape == (B, N_class)
    assert jnp.allclose(y_bf16, ref, atol=3e-2, rtol=3e-2)

    # Ragged batch path: B not a multiple of the tile -> masked last block
    B2 = 19
    x2 = jax.random.normal(kx, (B2, C, H, W), jnp.float32)
    ref2 = jnp.tanh(x2.reshape(B2, -1) @ w1 + b1) @ w2 + b2
    y2 = jax.block_until_ready(
        mpl_3_layer_classifier(x2, w1, b1, w2, b2, tb=16)
    )
    assert y2.shape == (B2, N_class)
    assert jnp.allclose(y2, ref2, atol=1e-5, rtol=1e-5)

    print("KERNEL_OK")
</pallas_src>

<mosaic_0001>
module attributes {stable_mosaic.version = 11 : i64} {
  func.func @_mlp3_kernel(%arg0: i32, %arg1: memref<2x784xf32, #tpu.memory_space<vmem>>, %arg2: memref<784x128xf32, #tpu.memory_space<vmem>>, %arg3: memref<1x128xf32, #tpu.memory_space<vmem>>, %arg4: memref<128x10xf32, #tpu.memory_space<vmem>>, %arg5: memref<1x10xf32, #tpu.memory_space<vmem>>, %arg6: memref<2x10xf32, #tpu.memory_space<vmem>>) attributes {dimension_semantics = [#tpu.dimension_semantics<parallel>], iteration_bounds = array<i64: 1>, scalar_prefetch = 0 : i64, scratch_operands = 0 : i64, tpu.core_type = #tpu.core_type<tc>, window_params = [{transform_indices = @transform_0, window_bounds = array<i64: 2, 784>}, {pipeline_mode = #tpu.pipeline_mode<synchronous>, transform_indices = @transform_1, window_bounds = array<i64: 784, 128>}, {pipeline_mode = #tpu.pipeline_mode<synchronous>, transform_indices = @transform_2, window_bounds = array<i64: 1, 128>}, {pipeline_mode = #tpu.pipeline_mode<synchronous>, transform_indices = @transform_3, window_bounds = array<i64: 128, 10>}, {pipeline_mode = #tpu.pipeline_mode<synchronous>, transform_indices = @transform_4, window_bounds = array<i64: 1, 10>}, {transform_indices = @transform_5, window_bounds = array<i64: 2, 10>}]} {
    %c0 = arith.constant 0 : index
    %c0_0 = arith.constant 0 : index
    %0 = vector.load %arg1[%c0, %c0_0] : memref<2x784xf32, #tpu.memory_space<vmem>>, vector<2x784xf32>
    %c0_1 = arith.constant 0 : index
    %c0_2 = arith.constant 0 : index
    %1 = vector.load %arg2[%c0_1, %c0_2] : memref<784x128xf32, #tpu.memory_space<vmem>>, vector<784x128xf32>
    %cst = arith.constant dense<0.000000e+00> : vector<2x128xf32>
    %2 = tpu.matmul %0, %1, %cst {dimension_numbers = #tpu.dot_dimension_numbers<[1], [0], [0], [1], [0, 0, 1, 1], [], []>} : vector<2x784xf32>, vector<784x128xf32>, vector<2x128xf32> -> vector<2x128xf32>
    %c0_3 = arith.constant 0 : index
    %c0_4 = arith.constant 0 : index
    %3 = vector.load %arg3[%c0_3, %c0_4] : memref<1x128xf32, #tpu.memory_space<vmem>>, vector<1x128xf32>
    %4 = vector.broadcast %3 : vector<1x128xf32> to vector<2x128xf32>
    %5 = arith.addf %2, %4 : vector<2x128xf32>
    %6 = math.tanh %5 : vector<2x128xf32>
    %c0_5 = arith.constant 0 : index
    %c0_6 = arith.constant 0 : index
    %7 = vector.load %arg4[%c0_5, %c0_6] : memref<128x10xf32, #tpu.memory_space<vmem>>, vector<128x10xf32>
    %cst_7 = arith.constant dense<0.000000e+00> : vector<2x10xf32>
    %8 = tpu.matmul %6, %7, %cst_7 {dimension_numbers = #tpu.dot_dimension_numbers<[1], [0], [0], [1], [0, 0, 1, 1], [], []>} : vector<2x128xf32>, vector<128x10xf32>, vector<2x10xf32> -> vector<2x10xf32>
    %c0_8 = arith.constant 0 : index
    %c0_9 = arith.constant 0 : index
    %9 = vector.load %arg5[%c0_8, %c0_9] : memref<1x10xf32, #tpu.memory_space<vmem>>, vector<1x10xf32>
    %10 = vector.broadcast %9 : vector<1x10xf32> to vector<2x10xf32>
    %11 = arith.addf %8, %10 : vector<2x10xf32>
    %c0_10 = arith.constant 0 : index
    %c0_11 = arith.constant 0 : index
    %12 = vector.load %arg6[%c0_10, %c0_11] : memref<2x10xf32, #tpu.memory_space<vmem>>, vector<2x10xf32>
    tpu.vector_store %arg6[%c0_10, %c0_11], %11 {strides = array<i32>} : memref<2x10xf32, #tpu.memory_space<vmem>>, vector<2x10xf32>,
    return
  }
  func.func @transform_0(%arg0: i32) -> (i32, i32) {
    %c0_i32 = arith.constant 0 : i32
    %c0_i32_0 = arith.constant 0 : i32
    return %arg0, %c0_i32 : i32, i32
  }
  func.func @transform_1(%arg0: i32) -> (i32, i32) {
    %c0_i32 = arith.constant 0 : i32
    %c0_i32_0 = arith.constant 0 : i32
    %c0_i32_1 = arith.constant 0 : i32
    return %c0_i32, %c0_i32_0 : i32, i32
  }
  func.func @transform_2(%arg0: i32) -> (i32, i32) {
    %c0_i32 = arith.constant 0 : i32
    %c0_i32_0 = arith.constant 0 : i32
    %c0_i32_1 = arith.constant 0 : i32
    return %c0_i32, %c0_i32_0 : i32, i32
  }
  func.func @transform_3(%arg0: i32) -> (i32, i32) {
    %c0_i32 = arith.constant 0 : i32
    %c0_i32_0 = arith.constant 0 : i32
    %c0_i32_1 = arith.constant 0 : i32
    return %c0_i32, %c0_i32_0 : i32, i32
  }
  func.func @transform_4(%arg0: i32) -> (i32, i32) {
    %c0_i32 = arith.constant 0 : i32
    %c0_i32_0 = arith.constant 0 : i32
    %c0_i32_1 = arith.constant 0 : i32
    return %c0_i32, %c0_i32_0 : i32, i32
  }
  func.func @transform_5(%arg0: i32) -> (i32, i32) {
    %c0_i32 = arith.constant 0 : i32
    %c0_i32_0 = arith.constant 0 : i32
    return %arg0, %c0_i32 : i32, i32
  }
}

</mosaic_0001>

<bundles_post_ra>
// kernel: tpu_custom_call.1
= control target key start
LH: loop header
LB: loop body
LE: loop exit
PB: predicated region body
PF: predicated region fallthrough
CT: control target
= control target key end

     0   :  { %10 = vsyncpa [#allocation3], 0  ;;  %s1072_s0 = inlined_call_operand.vmem [shape: f32[2,784], index: 0, kind: input, shape index: {}]   ;;  %s1073_s1 = inlined_call_operand.hbm [shape: f32[784,128], index: 1, kind: input, shape index: {}]   ;;  %s1074_s2 = inlined_call_operand.vmem [shape: f32[1,128], index: 2, kind: input, shape index: {}]   ;;  %s1075_s3 = inlined_call_operand.vmem [shape: f32[128,10], index: 3, kind: input, shape index: {}]   ;;  %s1076_s4 = inlined_call_operand.vmem [shape: f32[1,10], index: 4, kind: input, shape index: {}]   ;;  %s1077_s5 = inlined_call_operand.hbm [shape: f32[2,10], index: 5, kind: output, shape index: {}]  }
   0x1   :  { %11 = vsyncpa [#allocation4], 0  ;;  %s930_s18 = smov [#allocation2]   ;;  %s882_s22 = scalar_lea.hbm %s1073_s1, 12544 }
   0x2   :  { %s19_s19 = sshll.u32 %s930_s18, 4  ;;  %p883_p0 = scmp.ne.s32.totalorder %s1073_s1, %s882_s22  ;;  %s20_s19 = int_to_ptr.vmem [resolvable:$true] %s19_s19 }
   0x3   :  { %p886_p1 = scmp.lt.u32.totalorder %s882_s22, %s1073_s1 }
   0x5   :  { %p888_p2 = pnand %p886_p1, %p883_p0 }
   0x7   :  { %891 = shalt.err (!%p888_p2)
}
   0x8   :  { %s892_s27 = scalar_lea.vmem %s20_s19, 12544  ;;  %p897_p4 = scmp.lt.s32.totalorder %s20_s19, %s20_s19 }
   0x9   :  { %p893_p3 = scmp.ne.s32.totalorder %s20_s19, %s892_s27  ;;  %p898_p5 = scmp.lt.s32.totalorder %s892_s27, %s892_s27 }
   0xb   :  { %p899_p6 = por %p898_p5, %p897_p4 }
   0xd   :  { %p900_p7 = pnand %p899_p6, %p893_p3 }
   0xf   :  { %903 = shalt.err (!%p900_p7)
}
  0x10   :  { %s931_s28 = smov 128   ;;  %s932_s29 = smov 8  }
  0x11   :  { %25 = dma.hbm_to_vmem [thread:$0]  %s1073_s1, 12544, %s20_s19, [#allocation3], %s931_s28, %s931_s28, %s932_s29  }
  0x12   :  { %926 = dma.done.wait [#allocation3], 12544  }
  0x13   :  { %927 = vsyncadd [#allocation3], 4294954752  ;;  %v53_v0 = vld [vmem:[#allocation2 + $0x80] sm:$0xff]  ;;  %v54_v1 = vld [vmem:[#allocation2 + $0x88] sm:$0xff]  ;;  %v933_v43 = vmov 1983009808   ;;  %v148_v45 = vlaneseq }
  0x14   :  { %v37_v2 = vld [vmem:[#allocation2] sm:$0xff]  ;;  %v747_v3 = vpack.c.bf16 %v54_v1, %v53_v0  ;;  %v38_v4 = vld [vmem:[#allocation2 + $0x8] sm:$0xff]  ;;  %v55_v11 = vld [vmem:[#allocation2 + $0x90] sm:$0xff]  ;;  %v146_v44 = vunpack.c.l.s4 %v933_v43  ;;  %vm935_vm0 = vmmov 0   ;;  %vm183_vm1 = vcmask 130048  }
  0x15   :  { %v85_v5 = vld [vmem:[#allocation2 + $0x180] sm:$0xff]  ;;  %v86_v6 = vld [vmem:[#allocation2 + $0x188] sm:$0xff]  ;;  %v749_v7 = vpack.c.bf16 %v38_v4, %v37_v2  ;;  %v56_v13 = vld [vmem:[#allocation2 + $0x98] sm:$0xff]  ;;  %v149_v60 = vshrl.u32 %v148_v45, 7  ;;  %vm560_vm2 = vcmask 74752  }
  0x16   :  { %v779_v8 = vpack.c.bf16 %v86_v6, %v85_v5  ;;  %v69_v9 = vld [vmem:[#allocation2 + $0x100] sm:$0xff]  ;;  %v70_v10 = vld [vmem:[#allocation2 + $0x108] sm:$0xff]  ;;  %748 = vmatprep.subr.bf16.mxu0 %v747_v3  ;;  %v39_v14 = vld [vmem:[#allocation2 + $0x10] sm:$0xff]  ;;  %v751_v16 = vpack.c.bf16 %v56_v13, %v55_v11  ;;  %v147_v59 = vunpack.c.0.s8 %v146_v44 }
  0x17   :  { %v781_v12 = vpack.c.bf16 %v70_v10, %v69_v9  ;;  %v40_v15 = vld [vmem:[#allocation2 + $0x18] sm:$0xff]  ;;  %750 = vmatpush3.bf16.msra.mxu0 %v749_v7  ;;  %v87_v18 = vld [vmem:[#allocation2 + $0x190] sm:$0xff]  ;;  %v57_v23 = vld [vmem:[#allocation2 + $0xa0] sm:$0xff] }
  0x18   :  { %780 = vmatprep.subr.bf16.mxu1 %v779_v8  ;;  %v753_v17 = vpack.c.bf16 %v40_v15, %v39_v14  ;;  %v88_v19 = vld [vmem:[#allocation2 + $0x198] sm:$0xff]  ;;  %v71_v20 = vld [vmem:[#allocation2 + $0x110] sm:$0xff]  ;;  %v58_v24 = vld [vmem:[#allocation2 + $0xa8] sm:$0xff]  ;;  %752 = vmatprep.subr.bf16.mxu0 %v751_v16  ;;  %v980_v10 = vsub.s32 %v147_v59, %v149_v60 }
  0x19   :  { %782 = vmatpush3.bf16.msra.mxu1 %v781_v12  ;;  %v783_v21 = vpack.c.bf16 %v88_v19, %v87_v18  ;;  %v72_v22 = vld [vmem:[#allocation2 + $0x118] sm:$0xff]  ;;  %v755_v26 = vpack.c.bf16 %v58_v24, %v57_v23  ;;  %v41_v27 = vld [vmem:[#allocation2 + $0x20] sm:$0xff]  ;;  %v42_v28 = vld [vmem:[#allocation2 + $0x28] sm:$0xff] }
  0x1a   :  { %v785_v25 = vpack.c.bf16 %v72_v22, %v71_v20  ;;  %v89_v29 = vld [vmem:[#allocation2 + $0x1a0] sm:$0xff]  ;;  %v90_v30 = vld [vmem:[#allocation2 + $0x1a8] sm:$0xff]  ;;  %v757_v33 = vpack.c.bf16 %v42_v28, %v41_v27  ;;  %v59_v35 = vld [vmem:[#allocation2 + $0xb0] sm:$0xff] }
  0x1b   :  { %784 = vmatprep.subr.bf16.mxu1 %v783_v21  ;;  %v73_v31 = vld [vmem:[#allocation2 + $0x120] sm:$0xff]  ;;  %v74_v32 = vld [vmem:[#allocation2 + $0x128] sm:$0xff]  ;;  %754 = vmatpush3.bf16.msra.mxu0 %v753_v17  ;;  %v787_v34 = vpack.c.bf16 %v90_v30, %v89_v29  ;;  %v60_v36 = vld [vmem:[#allocation2 + $0xb8] sm:$0xff] }
  0x1c   :  { %v43_v37 = vld [vmem:[#allocation2 + $0x30] sm:$0xff]  ;;  %756 = vmatprep.subr.bf16.mxu0 %v755_v26  ;;  %v789_v38 = vpack.c.bf16 %v74_v32, %v73_v31  ;;  %v759_v39 = vpack.c.bf16 %v60_v36, %v59_v35  ;;  %v44_v40 = vld [vmem:[#allocation2 + $0x38] sm:$0xff]  ;;  %v61_v49 = vld [vmem:[#allocation2 + $0xc0] sm:$0xff] }
  0x1d   :  { %786 = vmatpush3.bf16.msra.mxu1 %v785_v25  ;;  %v91_v41 = vld [vmem:[#allocation2 + $0x1b0] sm:$0xff]  ;;  %v92_v42 = vld [vmem:[#allocation2 + $0x1b8] sm:$0xff]  ;;  %v62_v50 = vld [vmem:[#allocation2 + $0xc8] sm:$0xff]  ;;  %v761_v51 = vpack.c.bf16 %v44_v40, %v43_v37 }
  0x1e   :  { %788 = vmatprep.subr.bf16.mxu1 %v787_v34  ;;  %v791_v46 = vpack.c.bf16 %v92_v42, %v91_v41  ;;  %v75_v47 = vld [vmem:[#allocation2 + $0x130] sm:$0xff]  ;;  %v76_v48 = vld [vmem:[#allocation2 + $0x138] sm:$0xff]  ;;  %v93_v52 = vld [vmem:[#allocation2 + $0x1c0] sm:$0xff]  ;;  %v763_v55 = vpack.c.bf16 %v62_v50, %v61_v49 }
  0x1f   :  { %758 = vmatpush3.bf16.msra.mxu0 %v757_v33  ;;  %v94_v53 = vld [vmem:[#allocation2 + $0x1c8] sm:$0xff]  ;;  %v793_v54 = vpack.c.bf16 %v76_v48, %v75_v47  ;;  %v45_v56 = vld [vmem:[#allocation2 + $0x40] sm:$0xff]  ;;  %v63_v63 = vld [vmem:[#allocation2 + $0xd0] sm:$0xff] }
  0x20   :  { %760 = vmatprep.subr.bf16.mxu0 %v759_v39  ;;  %v46_v57 = vld [vmem:[#allocation2 + $0x48] sm:$0xff]  ;;  %v77_v58 = vld [vmem:[#allocation2 + $0x140] sm:$0xff]  ;;  %v795_v61 = vpack.c.bf16 %v94_v53, %v93_v52  ;;  %v64_v0 = vld [vmem:[#allocation2 + $0xd8] sm:$0xff] }
  0x21   :  { %790 = vmatpush3.bf16.msra.mxu1 %v789_v38  ;;  %v78_v62 = vld [vmem:[#allocation2 + $0x148] sm:$0xff]  ;;  %v95_v1 = vld [vmem:[#allocation2 + $0x1d0] sm:$0xff]  ;;  %v96_v2 = vld [vmem:[#allocation2 + $0x1d8] sm:$0xff]  ;;  %v765_v3 = vpack.c.bf16 %v46_v57, %v45_v56  ;;  %v767_v6 = vpack.c.bf16 %v64_v0, %v63_v63 }
  0x22   :  { %792 = vmatprep.subr.bf16.mxu1 %v791_v46  ;;  %v47_v4 = vld [vmem:[#allocation2 + $0x50] sm:$0xff]  ;;  %v797_v5 = vpack.c.bf16 %v78_v62, %v77_v58  ;;  %v48_v7 = vld [vmem:[#allocation2 + $0x58] sm:$0xff]  ;;  %v799_v11 = vpack.c.bf16 %v96_v2, %v95_v1  ;;  %v65_v12 = vld [vmem:[#allocation2 + $0xe0] sm:$0xff]  ;;  %v934_v62 = vmov 0.0|0.0  }
  0x23   :  { %762 = vmatpush3.bf16.msra.mxu0 %v761_v51  ;;  %v79_v8 = vld [vmem:[#allocation2 + $0x150] sm:$0xff]  ;;  %v80_v9 = vld [vmem:[#allocation2 + $0x158] sm:$0xff]  ;;  %v66_v13 = vld [vmem:[#allocation2 + $0xe8] sm:$0xff]  ;;  %v769_v16 = vpack.c.bf16 %v48_v7, %v47_v4 }
  0x24   :  { %764 = vmatprep.subr.bf16.mxu0 %v763_v55  ;;  %v97_v14 = vld [vmem:[#allocation2 + $0x1e0] sm:$0xff]  ;;  %v98_v15 = vld [vmem:[#allocation2 + $0x1e8] sm:$0xff]  ;;  %v801_v17 = vpack.c.bf16 %v80_v9, %v79_v8  ;;  %v771_v19 = vpack.c.bf16 %v66_v13, %v65_v12  ;;  %v67_v27 = vld [vmem:[#allocation2 + $0xf0] sm:$0xff]  ;;  %v936_v8 = vmov 0.0  }
  0x25   :  { %794 = vmatpush3.bf16.msra.mxu1 %v793_v54  ;;  %v35_v18 = vld [vmem:[%s1072_s0] sm:$0xff]  ;;  %v50_v21 = vld [vmem:[#allocation2 + $0x68] sm:$0xff]  ;;  %v803_v25 = vpack.c.bf16 %v98_v15, %v97_v14  ;;  %v68_v28 = vld [vmem:[#allocation2 + $0xf8] sm:$0xff] }
  0x26   :  { %796 = vmatprep.subr.bf16.mxu1 %v795_v61  ;;  %v49_v20 = vld [vmem:[#allocation2 + $0x60] sm:$0xff]  ;;  %v151_v23 = vrot.slane %v35_v18, %v980_v10  ;;  %v144_v24 = vcombine.high %v35_v18, %v35_v18  ;;  %v82_v26 = vld [vmem:[#allocation2 + $0x168] sm:$0xff]  ;;  %v99_v29 = vld [vmem:[#allocation2 + $0x1f0] sm:$0xff]  ;;  %v775_v35 = vpack.c.bf16 %v68_v28, %v67_v27 }
  0x27   :  { %766 = vmatpush3.bf16.msra.mxu0 %v765_v3  ;;  %v81_v22 = vld [vmem:[#allocation2 + $0x160] sm:$0xff]  ;;  %v100_v30 = vld [vmem:[#allocation2 + $0x1f8] sm:$0xff]  ;;  %v773_v33 = vpack.c.bf16 %v50_v21, %v49_v20  ;;  %v51_v36 = vld [vmem:[#allocation2 + $0x70] sm:$0xff] }
  0x28   :  { %768 = vmatprep.subr.bf16.mxu0 %v767_v6  ;;  %v159_v31 = vcombine.high %v151_v23, %v151_v23  ;;  %v158_v32 = vrot.slane %v144_v24, %v980_v10  ;;  %v805_v34 = vpack.c.bf16 %v82_v26, %v81_v22  ;;  %v52_v37 = vld [vmem:[#allocation2 + $0x78] sm:$0xff]  ;;  %v83_v38 = vld [vmem:[#allocation2 + $0x170] sm:$0xff]  ;;  %v807_v40 = vpack.c.bf16 %v100_v30, %v99_v29  ;;  %v117_v42 = vld [vmem:[#allocation2 + $0x280] sm:$0xff] }
  0x29   :  { %798 = vmatpush3.bf16.msra.mxu1 %v797_v5  ;;  %v84_v41 = vld [vmem:[#allocation2 + $0x178] sm:$0xff]  ;;  %v118_v43 = vld [vmem:[#allocation2 + $0x288] sm:$0xff]  ;;  %v777_v44 = vpack.c.bf16 %v52_v37, %v51_v36  ;;  %v101_v47 = vld [vmem:[#allocation2 + $0x200] sm:$0xff] }
  0x2a   :  { %800 = vmatprep.subr.bf16.mxu1 %v799_v11  ;;  %v160_v39 = vcombine.high %v158_v32, %v158_v32  ;;  %250 = vmatprep.mubr.f32.mxu0 %v159_v31  ;;  %v809_v45 = vpack.c.bf16 %v84_v41, %v83_v38  ;;  %v811_v46 = vpack.c.bf16 %v118_v43, %v117_v42  ;;  %v102_v48 = vld [vmem:[#allocation2 + $0x208] sm:$0xff]  ;;  %v119_v49 = vld [vmem:[#allocation2 + $0x290] sm:$0xff]  ;;  %v120_v50 = vld [vmem:[#allocation2 + $0x298] sm:$0xff] }
  0x2b   :  { %770 = vmatpush3.bf16.msra.mxu0 %v769_v16  ;;  %v813_v51 = vpack.c.bf16 %v102_v48, %v101_v47  ;;  %v36_v52 = vld [vmem:[%s1072_s0 + $0x8] sm:$0x3f]  ;;  %v133_v53 = vld [vmem:[#allocation2 + $0x300] sm:$0xff]  ;;  %v815_v54 = vpack.c.bf16 %v120_v50, %v119_v49  ;;  %v103_v55 = vld [vmem:[#allocation2 + $0x210] sm:$0xff] }
  0x2c   :  { %772 = vmatprep.subr.bf16.mxu0 %v771_v19  ;;  %320 = vmatprep.mubr.f32.mxu1 %v160_v39  ;;  %v104_v56 = vld [vmem:[#allocation2 + $0x218] sm:$0xff]  ;;  %v161_v57 = vcombine.high %v36_v52, %v36_v52  ;;  %v991_v58 = vrot.slane %v36_v52, %v980_v10  ;;  %v134_v59 = vld [vmem:[#allocation2 + $0x308] sm:$0xff]  ;;  %v121_v60 = vld [vmem:[#allocation2 + $0x2a0] sm:$0xff] }
  0x2d   :  { %802 = vmatpush3.bf16.msra.mxu1 %v801_v17  ;;  %v122_v61 = vld [vmem:[#allocation2 + $0x2a8] sm:$0xff]  ;;  %v844_v63 = vpack.c.bf16 %v134_v59, %v133_v53  ;;  %v817_v1 = vpack.c.bf16 %v104_v56, %v103_v55  ;;  %v105_v3 = vld [vmem:[#allocation2 + $0x220] sm:$0xff]  ;;  %v123_v6 = vld [vmem:[#allocation2 + $0x2b0] sm:$0xff] }
  0x2e   :  { %804 = vmatprep.subr.bf16.mxu1 %v803_v25  ;;  %v176_v0 = vcombine.high %v991_v58, %v991_v58  ;;  %v819_v2 = vpack.c.bf16 %v122_v61, %v121_v60  ;;  %v106_v4 = vld [vmem:[#allocation2 + $0x228] sm:$0xff]  ;;  %v175_v5 = vrot.slane %v161_v57, %v980_v10  ;;  %v124_v7 = vld [vmem:[#allocation2 + $0x2b8] sm:$0xff]  ;;  %v107_v12 = vld [vmem:[#allocation2 + $0x230] sm:$0xff] }
  0x2f   :  { %774 = vmatpush3.bf16.msra.mxu0 %v773_v33  ;;  %v821_v9 = vpack.c.bf16 %v106_v4, %v105_v3  ;;  %v823_v11 = vpack.c.bf16 %v124_v7, %v123_v6  ;;  %v108_v13 = vld [vmem:[#allocation2 + $0x238] sm:$0xff]  ;;  %v125_v14 = vld [vmem:[#allocation2 + $0x2c0] sm:$0xff]  ;;  %v126_v15 = vld [vmem:[#allocation2 + $0x2c8] sm:$0xff] }
  0x30   :  { %776 = vmatprep.subr.bf16.mxu0 %v775_v35  ;;  %v825_v10 = vpack.c.bf16 %v108_v13, %v107_v12  ;;  %v827_v16 = vpack.c.bf16 %v126_v15, %v125_v14  ;;  %v109_v17 = vld [vmem:[#allocation2 + $0x240] sm:$0xff]  ;;  %v110_v18 = vld [vmem:[#allocation2 + $0x248] sm:$0xff]  ;;  %v127_v19 = vld [vmem:[#allocation2 + $0x2d0] sm:$0xff] }
  0x31   :  { %806 = vmatpush3.bf16.msra.mxu1 %v805_v34  ;;  %v128_v20 = vld [vmem:[#allocation2 + $0x2d8] sm:$0xff]  ;;  %v829_v21 = vpack.c.bf16 %v110_v18, %v109_v17  ;;  %v129_v25 = vld [vmem:[#allocation2 + $0x2e0] sm:$0xff]  ;;  %v130_v26 = vld [vmem:[#allocation2 + $0x2e8] sm:$0xff] }
  0x32   :  { %808 = vmatprep.subr.bf16.mxu1 %v807_v40  ;;  %v831_v22 = vpack.c.bf16 %v128_v20, %v127_v19  ;;  %v112_v24 = vld [vmem:[#allocation2 + $0x258] sm:$0xff]  ;;  %v835_v28 = vpack.c.bf16 %v130_v26, %v129_v25  ;;  %v113_v29 = vld [vmem:[#allocation2 + $0x260] sm:$0xff]  ;;  %v114_v30 = vld [vmem:[#allocation2 + $0x268] sm:$0xff] }
  0x33   :  { %778 = vmatpush3.bf16.msra.mxu0 %v777_v44  ;;  %v131_v31 = vld [vmem:[#allocation2 + $0x2f0] sm:$0xff]  ;;  %v837_v33 = vpack.c.bf16 %v114_v30, %v113_v29  ;;  %v116_v36 = vld [vmem:[#allocation2 + $0x278] sm:$0xff]  ;;  %v467_v38 = vld [vmem:[%s1075_s3] sm:$0xff] }
  0x34   :  { %812 = vmatprep.subr.bf16.mxu0 %v811_v46  ;;  %v115_v35 = vld [vmem:[#allocation2 + $0x270] sm:$0xff]  ;;  %v468_v39 = vld [vmem:[%s1075_s3 + $0x8] sm:$0xff]  ;;  %v470_v42 = vld [vmem:[%s1075_s3 + $0x18] sm:$0xff] }
  0x35   :  { %810 = vmatpush3.bf16.msra.mxu1 %v809_v45  ;;  %v841_v37 = vpack.c.bf16 %v116_v36, %v115_v35  ;;  %v469_v40 = vld [vmem:[%s1075_s3 + $0x10] sm:$0xff]  ;;  %v847_v41 = vpack.c.bf16 %v468_v39, %v467_v38  ;;  %v471_v44 = vld [vmem:[%s1075_s3 + $0x20] sm:$0xff]  ;;  %v472_v45 = vld [vmem:[%s1075_s3 + $0x28] sm:$0xff] }
  0x36   :  { %843 = vmatprep.subr.bf16.mxu1 %v934_v62  ;;  %251 = vmatmul.mubr.f32.vlgmr.msra.gmra.mrb[0].mxu0 %v151_v23  ;;  %v111_v23 = vld [vmem:[#allocation2 + $0x250] sm:$0xff]  ;;  %v850_v43 = vpack.c.bf16 %v470_v42, %v469_v40  ;;  %v853_v46 = vpack.c.bf16 %v472_v45, %v471_v44  ;;  %v474_v48 = vld [vmem:[%s1075_s3 + $0x38] sm:$0xff]  ;;  %v475_v50 = vld [vmem:[%s1075_s3 + $0x40] sm:$0xff] }
  0x37   :  { %814 = vmatpush3.bf16.msra.mxu0 %v813_v51  ;;  %390 = vmatprep.mubr.f32.mxu0 %v176_v0  ;;  %v833_v27 = vpack.c.bf16 %v112_v24, %v111_v23  ;;  %v473_v47 = vld [vmem:[%s1075_s3 + $0x30] sm:$0xff]  ;;  %v476_v51 = vld [vmem:[%s1075_s3 + $0x48] sm:$0xff]  ;;  %v479_v56 = vld [vmem:[%s1075_s3 + $0x60] sm:$0xff] }
  0x38   :  { %321 = vmatmul.mubr.f32.vlgmr.msra.gmra.mrb[0].mxu1 %v158_v32  ;;  %816 = vmatprep.subr.bf16.mxu0 %v815_v54  ;;  %v132_v32 = vld [vmem:[#allocation2 + $0x2f8] sm:$0xff]  ;;  %v856_v49 = vpack.c.bf16 %v474_v48, %v473_v47  ;;  %v859_v52 = vpack.c.bf16 %v476_v51, %v475_v50  ;;  %v477_v53 = vld [vmem:[%s1075_s3 + $0x50] sm:$0xff]  ;;  %v480_v57 = vld [vmem:[%s1075_s3 + $0x68] sm:$0xff] }
  0x39   :  { %845 = vmatpush3.bf16.msra.mxu1 %v844_v63  ;;  %709 = vmatprep.mubr.msk.f32.mxu1 %vm935_vm0, %v936_v8  ;;  %v839_v34 = vpack.c.bf16 %v132_v32, %v131_v31  ;;  %v478_v54 = vld [vmem:[%s1075_s3 + $0x58] sm:$0xff]  ;;  %v481_v59 = vld [vmem:[%s1075_s3 + $0x70] sm:$0xff]  ;;  %v577_v0 = vld [vmem:[%s1074_s2] ss:$0 sm:$0xff]  ;;  %s937_s2 = smov [#allocation5]  }
  0x3a   :  { %846 = vmatprep.subr.bf16.mxu1 %v934_v62  ;;  %v862_v55 = vpack.c.bf16 %v478_v54, %v477_v53  ;;  %v482_v60 = vld [vmem:[%s1075_s3 + $0x78] sm:$0xff]  ;;  %s568_s17 = sshll.u32 %s937_s2, 4  ;;  %s569_s17 = int_to_ptr.vmem [resolvable:$true] %s568_s17 }
  0x3b   :  { %818 = vmatpush3.bf16.msra.mxu0 %v817_v1  ;;  %v868_v61 = vpack.c.bf16 %v482_v60, %v481_v59  ;;  %s904_s18 = scalar_lea.vmem %s569_s17, 32  ;;  %p909_p9 = scmp.lt.s32.totalorder %s569_s17, %s569_s17 }
  0x3c   :  { %820 = vmatprep.subr.bf16.mxu0 %v819_v2  ;;  %710 = vmatmul.mubr.msk.f32.vlgmr.msra.gmra.mrb[2].mxu1 %vm183_vm1, %v175_v5  ;;  %p905_p8 = scmp.ne.s32.totalorder %s569_s17, %s904_s18  ;;  %p910_p10 = scmp.lt.s32.totalorder %s904_s18, %s904_s18 }
  0x3d   :  { %744 = vmatprep.mubr.msk.f32.mxu1 %vm935_vm0, %v936_v8  ;;  %848 = vmatpush3.bf16.msra.mxu1 %v847_v41 }
  0x3e   :  { %849 = vmatprep.subr.bf16.mxu1 %v934_v62  ;;  %p911_p11 = por %p910_p10, %p909_p9 }
  0x3f   :  { %822 = vmatpush3.bf16.msra.mxu0 %v821_v9 }
  0x40   :  { %824 = vmatprep.subr.bf16.mxu0 %v823_v11  ;;  %p912_p12 = pnand %p911_p11, %p905_p8 }
  0x41   :  { %851 = vmatpush3.bf16.msra.mxu1 %v850_v43 }
  0x42   :  { %852 = vmatprep.subr.bf16.mxu1 %v934_v62 }
  0x43   :  { %826 = vmatpush3.bf16.msra.mxu0 %v825_v10  ;;  %v579_v10 = vld [vmem:[%s1076_s4] ss:$0 sm:$0xff] }
  0x44   :  { %828 = vmatprep.subr.bf16.mxu0 %v827_v16 }
  0x45   :  { %854 = vmatpush3.bf16.msra.mxu1 %v853_v46 }
  0x46   :  { %855 = vmatprep.subr.bf16.mxu1 %v934_v62 }
  0x47   :  { %830 = vmatpush3.bf16.msra.mxu0 %v829_v21 }
  0x48   :  { %832 = vmatprep.subr.bf16.mxu0 %v831_v22 }
  0x49   :  { %857 = vmatpush3.bf16.msra.mxu1 %v856_v49 }
  0x4a   :  { %858 = vmatprep.subr.bf16.mxu1 %v934_v62 }
  0x4b   :  { %834 = vmatpush3.bf16.msra.mxu0 %v833_v27 }
  0x4c   :  { %836 = vmatprep.subr.bf16.mxu0 %v835_v28 }
  0x4d   :  { %860 = vmatpush3.bf16.msra.mxu1 %v859_v52 }
  0x4e   :  { %861 = vmatprep.subr.bf16.mxu1 %v934_v62 }
  0x4f   :  { %838 = vmatpush3.bf16.msra.mxu0 %v837_v33 }
  0x50   :  { %840 = vmatprep.subr.bf16.mxu0 %v839_v34 }
  0x51   :  { %863 = vmatpush3.bf16.msra.mxu1 %v862_v55 }
  0x52   :  { %864 = vmatprep.subr.bf16.mxu1 %v934_v62 }
  0x53   :  { %842 = vmatpush3.bf16.msra.mxu0 %v841_v37 }
  0x56   :  { %391 = vmatmul.mubr.f32.vlgmr.msra.gmra.mrb[2].mxu0 %v991_v58  ;;  %v865_v58 = vpack.c.bf16 %v480_v57, %v479_v56 }
  0x58   :  { %866 = vmatpush3.bf16.msra.mxu1 %v865_v58 }
  0x59   :  { %867 = vmatprep.subr.bf16.mxu1 %v934_v62 }
  0x5c   :  { %869 = vmatpush3.bf16.msra.mxu1 %v868_v61 }
 0x109   :  { %v612_v63 = vpop.f32.mrb[0].mxu0 }
 0x10a   :  { %v613_v1 = vpop.f32.mrb[1].mxu0 }
 0x10b   :  { %v647_v2 = vpop.f32.mrb[0].mxu1  ;;  %v614_v3 = vadd.f32 %v613_v1, %v612_v63 }
 0x10c   :  { %v648_v4 = vpop.f32.mrb[1].mxu1 }
 0x10d   :  { %v649_v5 = vadd.f32 %v648_v4, %v647_v2  ;;  %v253_v6 = vadd.f32 %v614_v3, %v577_v0 }
 0x10f   :  { %v323_v7 = vadd.f32 %v649_v5, %v253_v6  ;;  %v462_v8 = vpop.f32.mrb[2].mxu1 }
 0x110   :  { %v711_v9 = vpop.f32.mrb[3].mxu1 }
 0x129   :  { %v682_v11 = vpop.f32.mrb[2].mxu0 }
 0x12a   :  { %v683_v12 = vpop.f32.mrb[3].mxu0 }
 0x12b   :  { %v684_v13 = vadd.f32 %v683_v12, %v682_v11 }
 0x12d   :  { %v393_v14 = vadd.f32 %v684_v13, %v323_v7 }
 0x12f   :  { %v463_v62 = vadd.f32 %v462_v8, %v393_v14 }
 0x131   :  { %880 = vtanh.f32 %v463_v62 }
 0x13b   :  { %v881_v15 = vpop.eup %880 }
 0x13c   :  { %745 = vmatmul.mubr.f32.vlgmr.msra.gmra.mrb[4].mxu1 %v881_v15 }
 0x20f   :  { %v556_v16 = vpop.f32.mrb[4].mxu1 }
 0x210   :  { %v557_v17 = vadd.f32 %v579_v10, %v556_v16  ;;  %v746_v18 = vpop.f32.mrb[5].mxu1 }
 0x212   :  { %561 = vst.msk [vmem:[#allocation5] sm:$0x3] %vm560_vm2, %v557_v17 }
 0x213   :  { %915 = shalt.err (!%p912_p12)
}
 0x214   :  { %s916_s21 = scalar_lea.hbm %s1077_s5, 32 }
 0x215   :  { %p917_p13 = scmp.ne.s32.totalorder %s1077_s5, %s916_s21  ;;  %p920_p0 = scmp.lt.u32.totalorder %s916_s21, %s1077_s5 }
 0x217   :  { %p922_p1 = pnand %p920_p0, %p917_p13 }
 0x219   :  { %925 = shalt.err (!%p922_p1)
}
 0x21a   :  { %571 = dma.vmem_to_hbm [thread:$0]  %s569_s17, 32, %s1077_s5, [#allocation4]  }
 0x21b   :  { %928 = dma.done.wait [#allocation4], 32  }
 0x21c   :  { %929 = vsyncadd [#allocation4], 4294967264 }
 0x21d   :  { %575 = vsyncpa [#allocation3], 1 }
 0x21e   :  { %576 = vsyncpa [#allocation4], 1 }

</bundles_post_ra>
